<compile_context>
chip_gen: v7x
topology: tpu7x:2x2x1
jax: 0.10.0
libtpu: 0.0.40
codegen_flags: <defaults>
</compile_context>

<pallas_src>
import math

import jax
import jax.numpy as jnp
from jax.experimental import pallas as pl
from jax.experimental.pallas import tpu as pltpu

ALPHA = 0.75
GAMMA = 2            # integer power -> x*x in kernel
EPS = 1e-8
LOG_EPS = math.log(EPS)
SMOOTH = 1.0
P_POW = 2            # integer power -> x*x in kernel
LANES = 128


def _vmem_capacity_bytes():
    try:
        info = pltpu.get_tpu_info()
        for name in ("vmem_capacity_bytes", "vmem_bytes", "vmem_size_bytes"):
            val = getattr(info, name, None)
            if val:
                return int(val)
    except Exception:
        pass
    return 128 << 20


def _pick_s_tile(n_rows, n_channels, target_bytes):
    """Rows of 128 lanes per spatial tile, sized so one f32 (C,St,128) block
    stays near target_bytes.  TODO(synk): tile the channel axis (two-pass
    softmax) instead of letting the block grow when C is very large."""
    max_rows = max(8, target_bytes // (n_channels * LANES * 4))
    if n_rows <= max_rows:
        return n_rows                         # single tile: block == full extent
    return int(max_rows - (max_rows % 8))     # multiple of 8 sublanes


def _make_kernel(n_channels, s_tile, tiles_per_split, hw_valid, needs_mask,
                 one_hot):
    cm1 = float(n_channels - 1)

    def kernel(pred_ref, targ_ref, out_ref, facc, qtacc, qqacc, ttacc):
        t = pl.program_id(2)

        @pl.when(t == 0)
        def _():
            facc[...] = jnp.zeros_like(facc)
            qtacc[...] = jnp.zeros_like(qtacc)
            qqacc[...] = jnp.zeros_like(qqacc)
            ttacc[...] = jnp.zeros_like(ttacc)

        pred = pred_ref[0].astype(jnp.float32)     # (C, St, 128)
        targ = targ_ref[0].astype(jnp.float32)     # (C, St, 128)

        if needs_mask:
            # OOB rows of edge blocks hold unspecified garbage and the <128
            # tail (HW % 128 != 0) holds zeros; zero the inputs BEFORE any
            # exp/log and drop their contributions from the sums below.
            p_idx = pl.program_id(1)
            row = jax.lax.broadcasted_iota(jnp.int32, (s_tile, LANES), 0)
            lane = jax.lax.broadcasted_iota(jnp.int32, (s_tile, LANES), 1)
            gpos = ((p_idx * tiles_per_split + t) * s_tile + row) * LANES + lane
            valid = gpos < hw_valid                       # (St, 128) bool
            validc = valid[None, :, :]
            pred = jnp.where(validc, pred, 0.0)
            targ = jnp.where(validc, targ, 0.0)

        # ---- Focal term: softmax over the (leading) channel axis ----
        m1 = jnp.max(pred, axis=0, keepdims=True)          # (1, St, 128)
        z = pred - m1
        e1 = jnp.exp(z)
        s1 = jnp.sum(e1, axis=0, keepdims=True)
        p = e1 * pl.reciprocal(s1, approx=True) + EPS      # softmax + eps
        # log(softmax + eps) ~= max(log_softmax, log(eps)): keeps the module's
        # eps floor for confident-wrong classes without C extra logs.
        logp = jnp.maximum(z - jnp.log(s1), LOG_EPS)
        # approx reciprocal can push p a hair above 1 -> clamp before the log.
        one_m_p = jnp.maximum(1.0 - p, EPS)
        term_true = (-ALPHA) * (one_m_p * one_m_p) * logp
        term_false = (ALPHA - 1.0) * (p * p) * jnp.log(one_m_p)
        # term_true*t + term_false*(1-t) without materializing (1-t)
        focal_t = jnp.sum(term_false + (term_true - term_false) * targ, axis=0)

        # ---- Dice regularizer on softmax(predict*target) ----
        tt_t = jnp.sum(targ * targ, axis=0)                 # (St, 128)
        if one_hot:
            # One-hot target: pred*targ has the hot logit x in one channel and
            # 0 elsewhere, so the channel softmax has a closed form needing
            # 2 exps/position:  q_hot = e^x/(e^x+C-1), q_cold = 1/(e^x+C-1).
            x = jnp.sum(pred * targ, axis=0)                # hot-channel logit
            tsum = jnp.sum(targ, axis=0)                    # 1 (one-hot) / 0
            m2 = jnp.maximum(x, 0.0)
            e_hot = jnp.exp(x - m2)
            e_cold = jnp.exp(-m2)
            inv_d = pl.reciprocal(e_hot + cm1 * e_cold, approx=True)
            q_hot = e_hot * inv_d
            q_cold = e_cold * inv_d
            qt_t = tsum * q_hot
            qq_t = q_hot * q_hot + cm1 * (q_cold * q_cold)
        else:
            pt = pred * targ
            m2 = jnp.max(pt, axis=0, keepdims=True)
            e2 = jnp.exp(pt - m2)
            s2 = jnp.sum(e2, axis=0, keepdims=True)
            q = e2 * pl.reciprocal(s2, approx=True)
            qt_t = jnp.sum(q * targ, axis=0)
            qq_t = jnp.sum(q * q, axis=0)

        if needs_mask:
            # With zeroed inputs only term_false (focal) and q*q pick up
            # spurious contributions at invalid positions; q*t and t*t are
            # already zero there (targ == 0).
            focal_t = jnp.where(valid, focal_t, 0.0)
            qq_t = jnp.where(valid, qq_t, 0.0)

        # Vector accumulators: pure VPU adds; no per-tile cross-lane reduce.
        facc[...] += focal_t
        qtacc[...] += qt_t
        qqacc[...] += qq_t
        ttacc[...] += tt_t

        @pl.when(t == pl.num_programs(2) - 1)
        def _():
            partial = jnp.concatenate(
                [jnp.sum(facc[...], axis=0, keepdims=True),
                 jnp.sum(qtacc[...], axis=0, keepdims=True),
                 jnp.sum(qqacc[...], axis=0, keepdims=True),
                 jnp.sum(ttacc[...], axis=0, keepdims=True)], axis=0)
            out_ref[...] = partial.reshape(out_ref.shape)   # (1,1,4,128)

    return kernel


def focal_loss_with_dice_regularizer(predict, target, *,
                                     assume_one_hot_target=True,
                                     s_tile=None,
                                     parallel_splits=2):
    """predict, target: (N, C, H, W) arrays (NCHW, like the PyTorch module).

    assume_one_hot_target=True (module contract) enables the closed-form dice
    softmax and an exact bf16 transfer of the target; set False for arbitrary
    float targets (general channel-softmax path, target dtype kept)."""
    assert predict.shape == target.shape, "predict & target shape do not match"
    N, C, H, W = predict.shape
    HW = H * W

    vmem_cap = _vmem_capacity_bytes()
    small_vmem = vmem_cap <= (64 << 20)                  # v7x-class parts
    target_block_bytes = (1 << 20) if small_vmem else (2 << 20)
    vmem_limit_default = (32 << 20) if small_vmem else (64 << 20)

    S = pl.cdiv(HW, LANES)                               # rows of 128 lanes
    St = s_tile if s_tile is not None else _pick_s_tile(S, C, target_block_bytes)
    n_blocks = pl.cdiv(S, St)
    P = int(parallel_splits) if (parallel_splits and parallel_splits > 1
                                 and n_blocks >= parallel_splits) else 1
    T = pl.cdiv(n_blocks, P)
    needs_clamp = (P * T) != n_blocks
    needs_mask = (P * T * St * LANES) != HW

    pred = predict.reshape(N, C, HW)
    targ = target.reshape(N, C, HW)
    if assume_one_hot_target and targ.dtype == jnp.float32:
        targ = targ.astype(jnp.bfloat16)                 # exact for 0/1 labels
    # TODO(synk): optionally cast predict to bf16 here as well (halves its HBM
    # traffic on mem-bound v5e/v6e at a small, documented precision cost).
    if HW % LANES != 0:
        # Only pad the sub-128 tail needed for the lane-dense reshape; the
        # spatial-tile / parallel-split remainder is now handled by edge
        # blocks + the in-kernel mask (no full-tensor pad pass for that).
        pad = S * LANES - HW
        pred = jnp.pad(pred, ((0, 0), (0, 0), (0, pad)))
        targ = jnp.pad(targ, ((0, 0), (0, 0), (0, pad)))
    pred = pred.reshape(N, C, S, LANES)
    targ = targ.reshape(N, C, S, LANES)

    if needs_clamp:
        last_blk = n_blocks - 1

        def in_index(n, p, t):
            # Fully-OOB tiles of the last parallel chunk re-read the last
            # valid block; their contributions are zeroed by the mask.
            return (n, 0, jnp.minimum(p * T + t, last_blk), 0)
    else:
        def in_index(n, p, t):
            return (n, 0, p * T + t, 0)

    in_block = (1, C, St, LANES)
    use_deep_buffers = (not small_vmem) and (P * T) > 2

    def input_spec():
        if use_deep_buffers:
            try:  # smooths DMA jitter on mem-bound v5e/v6e; plenty of VMEM
                return pl.BlockSpec(in_block, in_index,
                                    pipeline_mode=pl.Buffered(3))
            except Exception:
                pass
        return pl.BlockSpec(in_block, in_index)

    f32_block = C * St * LANES * 4
    in_bytes = C * St * LANES * (pred.dtype.itemsize + targ.dtype.itemsize)
    acc_bytes = 4 * St * LANES * 4
    est = ((3 if use_deep_buffers else 2) * in_bytes + 12 * f32_block
           + acc_bytes + (4 << 20))
    vmem_limit = int(min(max(vmem_limit_default, est), (vmem_cap * 3) // 4))

    kernel = _make_kernel(C, St, T, HW, needs_mask, assume_one_hot_target)

    out = pl.pallas_call(
        kernel,
        out_shape=jax.ShapeDtypeStruct((N, P, 4, LANES), jnp.float32),
        grid_spec=pltpu.PrefetchScalarGridSpec(
            num_scalar_prefetch=0,
            grid=(N, P, T),
            in_specs=[input_spec(), input_spec()],
            out_specs=pl.BlockSpec((1, 1, 4, LANES),
                                   lambda n, p, t: (n, p, 0, 0)),
            scratch_shapes=[pltpu.VMEM((St, LANES), jnp.float32)] * 4,
        ),
        compiler_params=pltpu.CompilerParams(
            dimension_semantics=("parallel", "parallel", "arbitrary"),
            vmem_limit_bytes=vmem_limit,
        ),
    )(pred, targ)

    # Combine the lane-dense partial sums in JAX: lane/split reductions, the
    # per-sample dice ratio, and the final scalar.
    part = jnp.sum(out, axis=(1, 3))                     # (N, 4)
    focal = jnp.sum(part[:, 0])
    qt, qq, tt = part[:, 1], part[:, 2], part[:, 3]
    dice = 1.0 - 2.0 * (qt + SMOOTH) / (qq + tt + SMOOTH)
    return focal + 8.0 * jnp.sum(dice)


def _reference(predict, target):
    # Pure-JAX reference (exact PyTorch semantics, incl. +eps inside log).
    sm = jax.nn.softmax(predict, axis=1) + EPS
    tt = -ALPHA * (1.0 - sm) ** 2 * jnp.log(sm)
    tf = -(1.0 - ALPHA) * sm ** 2 * jnp.log(1.0 - sm)
    focal = jnp.sum(tt * target + tf * (1.0 - target))
    q = jax.nn.softmax(predict * target, axis=1).reshape(predict.shape[0], -1)
    t = target.reshape(target.shape[0], -1)
    num = 2.0 * (jnp.sum(q * t, axis=1) + SMOOTH)
    den = jnp.sum(q ** 2, axis=1) + jnp.sum(t ** 2, axis=1) + SMOOTH
    dice = jnp.sum(1.0 - num / den)
    return focal + 8.0 * dice


if __name__ == "__main__":
    key = jax.random.PRNGKey(0)

    def make_inputs(k, N, C, H, W):
        k1, k2 = jax.random.split(k)
        predict = jax.random.normal(k1, (N, C, H, W), dtype=jnp.float32)
        labels = jax.random.randint(k2, (N, H, W), 0, C)
        target = jax.nn.one_hot(labels, C, axis=1, dtype=jnp.float32)
        return predict, target

    # (shape, kwargs): default fast path; forced tiling + parallel split +
    # edge-block masking, exercising both the one-hot and general dice paths.
    configs = [
        ((2, 4, 16, 16), {}),
        ((1, 5, 40, 36), {"s_tile": 8, "parallel_splits": 2}),
        ((2, 4, 48, 64), {"s_tile": 8, "parallel_splits": 2,
                          "assume_one_hot_target": False}),
    ]
    for i, (shape, kwargs) in enumerate(configs):
        key, sub = jax.random.split(key)
        predict, target = make_inputs(sub, *shape)
        loss = jax.block_until_ready(
            focal_loss_with_dice_regularizer(predict, target, **kwargs))
        ref = jax.block_until_ready(_reference(predict, target))
        # Tolerance 1e-3: kernel uses approx reciprocals (softmax & dice
        # normalizers) and a clamped log-softmax; error << 1e-3 relative here.
        assert jnp.allclose(loss, ref, rtol=1e-3, atol=1e-3), (i, loss, ref)
    print("KERNEL_OK")
</pallas_src>

<mosaic_0001>
module attributes {stable_mosaic.version = 11 : i64} {
  func.func @kernel(%arg0: i32, %arg1: i32, %arg2: i32, %arg3: memref<1x4x2x128xf32, #tpu.memory_space<vmem>>, %arg4: memref<1x4x2x128xbf16, #tpu.memory_space<vmem>>, %arg5: memref<1x1x4x128xf32, #tpu.memory_space<vmem>>, %arg6: memref<2x128xf32, #tpu.memory_space<vmem>>, %arg7: memref<2x128xf32, #tpu.memory_space<vmem>>, %arg8: memref<2x128xf32, #tpu.memory_space<vmem>>, %arg9: memref<2x128xf32, #tpu.memory_space<vmem>>) attributes {dimension_semantics = [#tpu.dimension_semantics<parallel>, #tpu.dimension_semantics<parallel>, #tpu.dimension_semantics<arbitrary>], iteration_bounds = array<i64: 2, 1, 1>, scalar_prefetch = 0 : i64, scratch_operands = 4 : i64, tpu.core_type = #tpu.core_type<tc>, window_params = [{transform_indices = @transform_0, window_bounds = array<i64: 1, 4, 2, 128>}, {transform_indices = @transform_1, window_bounds = array<i64: 1, 4, 2, 128>}, {transform_indices = @transform_2, window_bounds = array<i64: 1, 1, 4, 128>}]} {
    %c0_i32 = arith.constant 0 : i32
    %0 = arith.cmpi eq, %arg2, %c0_i32 : i32
    %1 = arith.extui %0 : i1 to i32
    %c0_i32_0 = arith.constant 0 : i32
    %2 = arith.cmpi ne, %1, %c0_i32_0 : i32
    scf.if %2 {
      %cst_41 = arith.constant 0.000000e+00 : f32
      %81 = vector.broadcast %cst_41 : f32 to vector<2x128xf32>
      %c0_42 = arith.constant 0 : index
      %c0_43 = arith.constant 0 : index
      %82 = vector.load %arg6[%c0_42, %c0_43] : memref<2x128xf32, #tpu.memory_space<vmem>>, vector<2x128xf32>
      tpu.vector_store %arg6[%c0_42, %c0_43], %81 {strides = array<i32>} : memref<2x128xf32, #tpu.memory_space<vmem>>, vector<2x128xf32>,
      %cst_44 = arith.constant 0.000000e+00 : f32
      %83 = vector.broadcast %cst_44 : f32 to vector<2x128xf32>
      %c0_45 = arith.constant 0 : index
      %c0_46 = arith.constant 0 : index
      %84 = vector.load %arg7[%c0_45, %c0_46] : memref<2x128xf32, #tpu.memory_space<vmem>>, vector<2x128xf32>
      tpu.vector_store %arg7[%c0_45, %c0_46], %83 {strides = array<i32>} : memref<2x128xf32, #tpu.memory_space<vmem>>, vector<2x128xf32>,
      %cst_47 = arith.constant 0.000000e+00 : f32
      %85 = vector.broadcast %cst_47 : f32 to vector<2x128xf32>
      %c0_48 = arith.constant 0 : index
      %c0_49 = arith.constant 0 : index
      %86 = vector.load %arg8[%c0_48, %c0_49] : memref<2x128xf32, #tpu.memory_space<vmem>>, vector<2x128xf32>
      tpu.vector_store %arg8[%c0_48, %c0_49], %85 {strides = array<i32>} : memref<2x128xf32, #tpu.memory_space<vmem>>, vector<2x128xf32>,
      %cst_50 = arith.constant 0.000000e+00 : f32
      %87 = vector.broadcast %cst_50 : f32 to vector<2x128xf32>
      %c0_51 = arith.constant 0 : index
      %c0_52 = arith.constant 0 : index
      %88 = vector.load %arg9[%c0_51, %c0_52] : memref<2x128xf32, #tpu.memory_space<vmem>>, vector<2x128xf32>
      tpu.vector_store %arg9[%c0_51, %c0_52], %87 {strides = array<i32>} : memref<2x128xf32, #tpu.memory_space<vmem>>, vector<2x128xf32>,
    } else {
    }
    %c0 = arith.constant 0 : index
    %c0_1 = arith.constant 0 : index
    %c0_2 = arith.constant 0 : index
    %c0_3 = arith.constant 0 : index
    %3 = vector.load %arg3[%c0, %c0_1, %c0_2, %c0_3] : memref<1x4x2x128xf32, #tpu.memory_space<vmem>>, vector<1x4x2x128xf32>
    %4 = vector.shape_cast %3 : vector<1x4x2x128xf32> to vector<4x2x128xf32>
    %c0_4 = arith.constant 0 : index
    %c0_5 = arith.constant 0 : index
    %c0_6 = arith.constant 0 : index
    %c0_7 = arith.constant 0 : index
    %5 = vector.load %arg4[%c0_4, %c0_5, %c0_6, %c0_7] : memref<1x4x2x128xbf16, #tpu.memory_space<vmem>>, vector<1x4x2x128xbf16>
    %6 = vector.shape_cast %5 : vector<1x4x2x128xbf16> to vector<4x2x128xbf16>
    %7 = arith.extf %6 : vector<4x2x128xbf16> to vector<4x2x128xf32>
    %cst = arith.constant dense<0xFF800000> : vector<2x128xf32>
    %8 = vector.multi_reduction <maximumf>, %4, %cst [0] : vector<4x2x128xf32> to vector<2x128xf32>
    %9 = vector.shape_cast %8 : vector<2x128xf32> to vector<1x2x128xf32>
    %10 = vector.broadcast %9 : vector<1x2x128xf32> to vector<4x2x128xf32>
    %11 = arith.subf %4, %10 : vector<4x2x128xf32>
    %12 = math.exp %11 : vector<4x2x128xf32>
    %cst_8 = arith.constant dense<0.000000e+00> : vector<2x128xf32>
    %13 = vector.multi_reduction <add>, %12, %cst_8 [0] : vector<4x2x128xf32> to vector<2x128xf32>
    %14 = vector.shape_cast %13 : vector<2x128xf32> to vector<1x2x128xf32>
    %15 = tpu.reciprocal %14 {approx = true} : vector<1x2x128xf32> -> vector<1x2x128xf32>
    %16 = vector.broadcast %15 : vector<1x2x128xf32> to vector<4x2x128xf32>
    %17 = arith.mulf %12, %16 : vector<4x2x128xf32>
    %cst_9 = arith.constant 9.99999993E-9 : f32
    %18 = vector.broadcast %cst_9 : f32 to vector<4x2x128xf32>
    %19 = arith.addf %17, %18 : vector<4x2x128xf32>
    %20 = math.log %14 : vector<1x2x128xf32>
    %21 = vector.broadcast %20 : vector<1x2x128xf32> to vector<4x2x128xf32>
    %22 = arith.subf %11, %21 : vector<4x2x128xf32>
    %cst_10 = arith.constant -18.420681 : f32
    %23 = vector.broadcast %cst_10 : f32 to vector<4x2x128xf32>
    %24 = arith.maximumf %22, %23 : vector<4x2x128xf32>
    %cst_11 = arith.constant 1.000000e+00 : f32
    %25 = vector.broadcast %cst_11 : f32 to vector<4x2x128xf32>
    %26 = arith.subf %25, %19 : vector<4x2x128xf32>
    %cst_12 = arith.constant 9.99999993E-9 : f32
    %27 = vector.broadcast %cst_12 : f32 to vector<4x2x128xf32>
    %28 = arith.maximumf %26, %27 : vector<4x2x128xf32>
    %29 = arith.mulf %28, %28 : vector<4x2x128xf32>
    %cst_13 = arith.constant -7.500000e-01 : f32
    %30 = vector.broadcast %cst_13 : f32 to vector<4x2x128xf32>
    %31 = arith.mulf %30, %29 : vector<4x2x128xf32>
    %32 = arith.mulf %31, %24 : vector<4x2x128xf32>
    %33 = arith.mulf %19, %19 : vector<4x2x128xf32>
    %cst_14 = arith.constant -2.500000e-01 : f32
    %34 = vector.broadcast %cst_14 : f32 to vector<4x2x128xf32>
    %35 = arith.mulf %34, %33 : vector<4x2x128xf32>
    %36 = math.log %28 : vector<4x2x128xf32>
    %37 = arith.mulf %35, %36 : vector<4x2x128xf32>
    %38 = arith.subf %32, %37 : vector<4x2x128xf32>
    %39 = arith.mulf %38, %7 : vector<4x2x128xf32>
    %40 = arith.addf %37, %39 : vector<4x2x128xf32>
    %cst_15 = arith.constant dense<0.000000e+00> : vector<2x128xf32>
    %41 = vector.multi_reduction <add>, %40, %cst_15 [0] : vector<4x2x128xf32> to vector<2x128xf32>
    %42 = arith.mulf %7, %7 : vector<4x2x128xf32>
    %cst_16 = arith.constant dense<0.000000e+00> : vector<2x128xf32>
    %43 = vector.multi_reduction <add>, %42, %cst_16 [0] : vector<4x2x128xf32> to vector<2x128xf32>
    %44 = arith.mulf %4, %7 : vector<4x2x128xf32>
    %cst_17 = arith.constant dense<0.000000e+00> : vector<2x128xf32>
    %45 = vector.multi_reduction <add>, %44, %cst_17 [0] : vector<4x2x128xf32> to vector<2x128xf32>
    %cst_18 = arith.constant dense<0.000000e+00> : vector<2x128xf32>
    %46 = vector.multi_reduction <add>, %7, %cst_18 [0] : vector<4x2x128xf32> to vector<2x128xf32>
    %cst_19 = arith.constant 0.000000e+00 : f32
    %47 = vector.broadcast %cst_19 : f32 to vector<2x128xf32>
    %48 = arith.maximumf %45, %47 : vector<2x128xf32>
    %49 = arith.subf %45, %48 : vector<2x128xf32>
    %50 = math.exp %49 : vector<2x128xf32>
    %cst_20 = arith.constant 0.000000e+00 : f32
    %51 = vector.broadcast %cst_20 : f32 to vector<2x128xf32>
    %52 = arith.subf %51, %48 : vector<2x128xf32>
    %53 = math.exp %52 : vector<2x128xf32>
    %cst_21 = arith.constant 3.000000e+00 : f32
    %54 = vector.broadcast %cst_21 : f32 to vector<2x128xf32>
    %55 = arith.mulf %54, %53 : vector<2x128xf32>
    %56 = arith.addf %50, %55 : vector<2x128xf32>
    %57 = tpu.reciprocal %56 {approx = true} : vector<2x128xf32> -> vector<2x128xf32>
    %58 = arith.mulf %50, %57 : vector<2x128xf32>
    %59 = arith.mulf %53, %57 : vector<2x128xf32>
    %60 = arith.mulf %46, %58 : vector<2x128xf32>
    %61 = arith.mulf %58, %58 : vector<2x128xf32>
    %62 = arith.mulf %59, %59 : vector<2x128xf32>
    %cst_22 = arith.constant 3.000000e+00 : f32
    %63 = vector.broadcast %cst_22 : f32 to vector<2x128xf32>
    %64 = arith.mulf %63, %62 : vector<2x128xf32>
    %65 = arith.addf %61, %64 : vector<2x128xf32>
    %c0_23 = arith.constant 0 : index
    %c0_24 = arith.constant 0 : index
    %66 = vector.load %arg6[%c0_23, %c0_24] : memref<2x128xf32, #tpu.memory_space<vmem>>, vector<2x128xf32>
    %67 = arith.addf %66, %41 : vector<2x128xf32>
    %c0_25 = arith.constant 0 : index
    %c0_26 = arith.constant 0 : index
    %68 = vector.load %arg6[%c0_25, %c0_26] : memref<2x128xf32, #tpu.memory_space<vmem>>, vector<2x128xf32>
    tpu.vector_store %arg6[%c0_25, %c0_26], %67 {strides = array<i32>} : memref<2x128xf32, #tpu.memory_space<vmem>>, vector<2x128xf32>,
    %c0_27 = arith.constant 0 : index
    %c0_28 = arith.constant 0 : index
    %69 = vector.load %arg7[%c0_27, %c0_28] : memref<2x128xf32, #tpu.memory_space<vmem>>, vector<2x128xf32>
    %70 = arith.addf %69, %60 : vector<2x128xf32>
    %c0_29 = arith.constant 0 : index
    %c0_30 = arith.constant 0 : index
    %71 = vector.load %arg7[%c0_29, %c0_30] : memref<2x128xf32, #tpu.memory_space<vmem>>, vector<2x128xf32>
    tpu.vector_store %arg7[%c0_29, %c0_30], %70 {strides = array<i32>} : memref<2x128xf32, #tpu.memory_space<vmem>>, vector<2x128xf32>,
    %c0_31 = arith.constant 0 : index
    %c0_32 = arith.constant 0 : index
    %72 = vector.load %arg8[%c0_31, %c0_32] : memref<2x128xf32, #tpu.memory_space<vmem>>, vector<2x128xf32>
    %73 = arith.addf %72, %65 : vector<2x128xf32>
    %c0_33 = arith.constant 0 : index
    %c0_34 = arith.constant 0 : index
    %74 = vector.load %arg8[%c0_33, %c0_34] : memref<2x128xf32, #tpu.memory_space<vmem>>, vector<2x128xf32>
    tpu.vector_store %arg8[%c0_33, %c0_34], %73 {strides = array<i32>} : memref<2x128xf32, #tpu.memory_space<vmem>>, vector<2x128xf32>,
    %c0_35 = arith.constant 0 : index
    %c0_36 = arith.constant 0 : index
    %75 = vector.load %arg9[%c0_35, %c0_36] : memref<2x128xf32, #tpu.memory_space<vmem>>, vector<2x128xf32>
    %76 = arith.addf %75, %43 : vector<2x128xf32>
    %c0_37 = arith.constant 0 : index
    %c0_38 = arith.constant 0 : index
    %77 = vector.load %arg9[%c0_37, %c0_38] : memref<2x128xf32, #tpu.memory_space<vmem>>, vector<2x128xf32>
    tpu.vector_store %arg9[%c0_37, %c0_38], %76 {strides = array<i32>} : memref<2x128xf32, #tpu.memory_space<vmem>>, vector<2x128xf32>,
    %c0_i32_39 = arith.constant 0 : i32
    %78 = arith.cmpi eq, %arg2, %c0_i32_39 : i32
    %79 = arith.extui %78 : i1 to i32
    %c0_i32_40 = arith.constant 0 : i32
    %80 = arith.cmpi ne, %79, %c0_i32_40 : i32
    scf.if %80 {
      %c0_41 = arith.constant 0 : index
      %c0_42 = arith.constant 0 : index
      %81 = vector.load %arg6[%c0_41, %c0_42] : memref<2x128xf32, #tpu.memory_space<vmem>>, vector<2x128xf32>
      %cst_43 = arith.constant dense<0.000000e+00> : vector<128xf32>
      %82 = vector.multi_reduction <add>, %81, %cst_43 [0] : vector<2x128xf32> to vector<128xf32>
      %83 = vector.shape_cast %82 : vector<128xf32> to vector<1x128xf32>
      %c0_44 = arith.constant 0 : index
      %c0_45 = arith.constant 0 : index
      %84 = vector.load %arg7[%c0_44, %c0_45] : memref<2x128xf32, #tpu.memory_space<vmem>>, vector<2x128xf32>
      %cst_46 = arith.constant dense<0.000000e+00> : vector<128xf32>
      %85 = vector.multi_reduction <add>, %84, %cst_46 [0] : vector<2x128xf32> to vector<128xf32>
      %86 = vector.shape_cast %85 : vector<128xf32> to vector<1x128xf32>
      %c0_47 = arith.constant 0 : index
      %c0_48 = arith.constant 0 : index
      %87 = vector.load %arg8[%c0_47, %c0_48] : memref<2x128xf32, #tpu.memory_space<vmem>>, vector<2x128xf32>
      %cst_49 = arith.constant dense<0.000000e+00> : vector<128xf32>
      %88 = vector.multi_reduction <add>, %87, %cst_49 [0] : vector<2x128xf32> to vector<128xf32>
      %89 = vector.shape_cast %88 : vector<128xf32> to vector<1x128xf32>
      %c0_50 = arith.constant 0 : index
      %c0_51 = arith.constant 0 : index
      %90 = vector.load %arg9[%c0_50, %c0_51] : memref<2x128xf32, #tpu.memory_space<vmem>>, vector<2x128xf32>
      %cst_52 = arith.constant dense<0.000000e+00> : vector<128xf32>
      %91 = vector.multi_reduction <add>, %90, %cst_52 [0] : vector<2x128xf32> to vector<128xf32>
      %92 = vector.shape_cast %91 : vector<128xf32> to vector<1x128xf32>
      %93 = tpu.concatenate %83, %86, %89, %92 in 0 : vector<1x128xf32>, vector<1x128xf32>, vector<1x128xf32>, vector<1x128xf32> -> vector<4x128xf32>
      %94 = vector.shape_cast %93 : vector<4x128xf32> to vector<1x1x4x128xf32>
      %c0_53 = arith.constant 0 : index
      %c0_54 = arith.constant 0 : index
      %c0_55 = arith.constant 0 : index
      %c0_56 = arith.constant 0 : index
      %95 = vector.load %arg5[%c0_53, %c0_54, %c0_55, %c0_56] : memref<1x1x4x128xf32, #tpu.memory_space<vmem>>, vector<1x1x4x128xf32>
      tpu.vector_store %arg5[%c0_53, %c0_54, %c0_55, %c0_56], %94 {strides = array<i32>} : memref<1x1x4x128xf32, #tpu.memory_space<vmem>>, vector<1x1x4x128xf32>,
    } else {
    }
    return
  }
  func.func @transform_0(%arg0: i32, %arg1: i32, %arg2: i32) -> (i32, i32, i32, i32) {
    %c1_i32 = arith.constant 1 : i32
    %0 = arith.muli %arg1, %c1_i32 : i32
    %1 = arith.addi %0, %arg2 : i32
    %c0_i32 = arith.constant 0 : i32
    %c0_i32_0 = arith.constant 0 : i32
    %c0_i32_1 = arith.constant 0 : i32
    return %arg0, %c0_i32, %1, %c0_i32_0 : i32, i32, i32, i32
  }
  func.func @transform_1(%arg0: i32, %arg1: i32, %arg2: i32) -> (i32, i32, i32, i32) {
    %c1_i32 = arith.constant 1 : i32
    %0 = arith.muli %arg1, %c1_i32 : i32
    %1 = arith.addi %0, %arg2 : i32
    %c0_i32 = arith.constant 0 : i32
    %c0_i32_0 = arith.constant 0 : i32
    %c0_i32_1 = arith.constant 0 : i32
    return %arg0, %c0_i32, %1, %c0_i32_0 : i32, i32, i32, i32
  }
  func.func @transform_2(%arg0: i32, %arg1: i32, %arg2: i32) -> (i32, i32, i32, i32) {
    %c0_i32 = arith.constant 0 : i32
    %c0_i32_0 = arith.constant 0 : i32
    %c0_i32_1 = arith.constant 0 : i32
    return %arg0, %arg1, %c0_i32, %c0_i32_0 : i32, i32, i32, i32
  }
}

</mosaic_0001>

<bundles_post_ra>
// kernel: tpu_custom_call.1
= control target key start
LH: loop header
LB: loop body
LE: loop exit
PB: predicated region body
PF: predicated region fallthrough
CT: control target
= control target key end

     0   :  { %7 = vsyncpa [#allocation7], 0  ;;  %s1176_s0 = inlined_call_operand.hbm [shape: f32[2,4,2,128], index: 0, kind: input, shape index: {}]   ;;  %s1177_s1 = inlined_call_operand.hbm [shape: bf16[2,4,2,128], index: 1, kind: input, shape index: {}]   ;;  %s1178_s2 = inlined_call_operand.hbm [shape: f32[2,1,4,128], index: 2, kind: output, shape index: {}]  }
   0x1   :  { %9 = vsyncpa [#allocation7 + $0x1], 0 }
   0x2   :  { %10 = vsyncpa [#allocation10], 0 }
   0x3   :  { %12 = vsyncpa [#allocation10 + $0x1], 0 }
   0x4   :  { %13 = vsyncpa [#allocation8], 0 }
   0x5   :  { %15 = vsyncpa [#allocation8 + $0x1], 0  ;;  %s876_s9 = smov 0   ;;  %s878_s10 = smov 0  }
   0x6   :  { %s880_s11 = smov 0   ;;  %s882_s12 = smov 0  }
   0x7   :  { %s884_s13 = smov 0   ;;  %s886_s14 = smov 0  }
   0x8 LB: > { %s587_s15 = sadd.s32 4294967295, %s851_s14   ;;  %s588_s16 = sadd.s32 4294967294, %s851_s14   ;;  %s851_s14 = sphi %s886_s14, %s21_s14   ;;  %s847_s13 = sphi %s884_s13, %s1196_s13   ;;  %s843_s12 = sphi %s882_s12, %s1195_s12   ;;  %s839_s11 = sphi %s880_s11, %s1194_s11   ;;  %s835_s10 = sphi %s878_s10, %s1193_s10   ;;  %s831_s9 = sphi %s876_s9, %s1192_s9  }
   0x9   : > { %s40_s17 = sadd.s32 1, %s847_s13  ;;  %s51_s18 = sadd.s32 1, %s839_s11 }
   0xa   : > { %p42_p0 = scmp.ge.s32.totalorder %s40_s17, 2  ;;  %p58_p1 = scmp.ne.s32.totalorder %s839_s11, %s835_s10 }
   0xb   : > { %p59_p2 = scmp.eq.s32.totalorder %s851_s14, 0  ;;  %p64_p3 = scmp.ne.s32.totalorder %s835_s10, %s831_s9 }
   0xc   : > { %s1198_s17 = smov (%p42_p0, %s40_s17), 0  ;;  %p65_p5 = scmp.eq.s32.totalorder %s587_s15, 0 }
   0xd   : > { %p917_p4 = por %p59_p2, %p58_p1  ;;  %s46_s20 = ssub.s32 %s847_s13, %s1198_s17 }
   0xe   : > { %p120_p6 = scmp.eq.s32.totalorder %s587_s15, 1  ;;  %p49_p7 = scmp.eq.s32.totalorder %s46_s20, 0 }
   0xf   : > { %p923_p8 = por %p65_p5, %p64_p3  ;;  %p126_p10 = scmp.eq.s32.totalorder %s588_s16, 1 }
  0x10   : > { %p927_p9 = por %p120_p6, %p58_p1  ;;  %p624_p13 = scmp.lt.s32.totalorder %s851_s14, 2 }
  0x11   : > { %s1182_s21 = scalar_select %p923_p8, 1, 0 }
  0x12   : > { %s1183_s22 = scalar_select %p927_p9, 1, 0 }
  0x13   : > { %s932_s23 = scalar_select %p49_p7, %s839_s11, %s51_s18  }
  0x14   : > { %p934_p11 = por %p126_p10, %p64_p3  ;;  %s941_s25 = sand.u32 1, %s839_s11  }
  0x15   : > { %s591_s26 = sshll.u32 %s941_s25, 3  ;;  %s605_s27 = sshll.u32 %s847_s13, 7 }
  0x16   : > { %s1184_s24 = scalar_select %p934_p11, 1, 0 }
  0x17   : > { %s948_s30 = scalar_lea.hbm %s1176_s0, %s605_s27  ;;  %s150_s3 = scalar_lea.vmem [#allocation6], %s591_s26 }
  0x18   : > { %s159_s4 = sshll.u32 %s150_s3, 4  ;;  %p954_p0 = pnand %p624_p13, %p917_p4  ;;  %s950_s4 = int_to_ptr.vmem [resolvable:$true] %s159_s4 }
  0x19   : > { %s147_s6 = scalar_lea.sflag [#allocation7], %s941_s25  ;;  %s705_s7 = scalar_lea.hbm %s948_s30, 128 }
  0x1a   : > { %p706_p2 = scmp.ne.s32.totalorder %s948_s30, %s705_s7  ;;  %p707_p3 = pneg %p954_p0 }
  0x1b   : > { %s710_s16 = scalar_lea.hbm %s1176_s0, 256  ;;  %p711_p4 = scmp.lt.u32.totalorder %s948_s30, %s1176_s0 }
  0x1c   : > { %p708_p5 = pnand %p707_p3, %p706_p2  ;;  %p712_p7 = scmp.lt.u32.totalorder %s710_s16, %s705_s7 }
  0x1d   : > { %p714_p13 = scmp.lt.u32.totalorder %s705_s7, %s948_s30 }
  0x1e   : > { %p709_p6 = pneg %p708_p5  ;;  %p713_p10 = por %p712_p7, %p711_p4 }
  0x20   : > { %p715_p12 = por %p714_p13, %p713_p10 }
  0x22   : > { %p716_p1 = pnand %p715_p12, %p709_p6 }
  0x24   : > { %719 = shalt.err (!%p716_p1)
}
  0x25   : > { %s720_s20 = scalar_lea.vmem %s950_s4, 128  ;;  %s853_s26 = smov [#allocation6]  }
  0x26   : > { %p721_p2 = scmp.ne.s32.totalorder %s950_s4, %s720_s20  ;;  %s725_s27 = sshll.u32 %s853_s26, 4  ;;  %s726_s27 = int_to_ptr.vmem [resolvable:$false] %s725_s27 }
  0x27   : > { %s727_s28 = scalar_lea.vmem %s726_s27, 256  ;;  %p728_p9 = scmp.lt.s32.totalorder %s950_s4, %s726_s27 }
  0x28   : > { %p723_p5 = pnand %p721_p2, %p707_p3  ;;  %p729_p4 = scmp.lt.s32.totalorder %s727_s28, %s720_s20 }
  0x2a   : > { %p724_p11 = pneg %p723_p5  ;;  %p730_p7 = por %p729_p4, %p728_p9 }
  0x2c   : > { %p731_p10 = pnand %p730_p7, %p724_p11 }
  0x2e   : > { %734 = shalt.err (!%p731_p10)
}
  0x2f   : > { %s854_s29 = smov 32   ;;  %s855_s3 = smov 2  }
  0x30   : > { %616 = dma.hbm_to_vmem [thread:$0]  (!%p954_p0), %s948_s30, 128, %s950_s4, %s147_s6, %s854_s29, %s854_s29, %s855_s3  }
  0x31   : > { %p190_p12 = scmp.lt.s32.totalorder %s851_s14, 3  ;;  %s594_s7 = sshll.u32 %s941_s25, 2 }
  0x32   : > { %s606_s8 = sshll.u32 %s847_s13, 6  ;;  %p1186_p9 = scmp.ge.s32.totalorder %s851_s14, 1 }
  0x33   : > { %s999_s19 = scalar_lea.hbm %s1177_s1, %s606_s8  ;;  %s173_s20 = scalar_lea.vmem [#allocation9], %s594_s7 }
  0x34   : > { %p992_p11 = pnand %p1186_p9, %p190_p12  ;;  %s182_s26 = sshll.u32 %s173_s20, 4  ;;  %s1001_s26 = int_to_ptr.vmem [resolvable:$true] %s182_s26 }
  0x35   : > { %s170_s30 = scalar_lea.sflag [#allocation10], %s941_s25  ;;  %s735_s4 = scalar_lea.hbm %s999_s19, 64 }
  0x36   : > { %p736_p1 = scmp.ne.s32.totalorder %s999_s19, %s735_s4  ;;  %s740_s28 = scalar_lea.hbm %s1177_s1, 128 }
  0x37   : > { %p741_p2 = scmp.lt.u32.totalorder %s999_s19, %s1177_s1  ;;  %p742_p5 = scmp.lt.u32.totalorder %s740_s28, %s735_s4 }
  0x38   : > { %p738_p6 = pnand %p736_p1, %p707_p3  ;;  %p744_p7 = scmp.lt.u32.totalorder %s735_s4, %s999_s19 }
  0x39   : > { %p743_p4 = por %p742_p5, %p741_p2 }
  0x3a   : > { %p739_p13 = pneg %p738_p6 }
  0x3b   : > { %p745_p10 = por %p744_p7, %p743_p4 }
  0x3d   : > { %p746_p12 = pnand %p745_p10, %p739_p13 }
  0x3f   : > { %749 = shalt.err (!%p746_p12)
}
  0x40   : > { %s750_s7 = scalar_lea.vmem %s1001_s26, 64  ;;  %s856_s8 = smov [#allocation9]  }
  0x41   : > { %p751_p9 = scmp.ne.s32.totalorder %s1001_s26, %s750_s7  ;;  %s755_s16 = sshll.u32 %s856_s8, 4  ;;  %s756_s16 = int_to_ptr.vmem [resolvable:$false] %s755_s16 }
  0x42   : > { %s757_s18 = scalar_lea.vmem %s756_s16, 128  ;;  %p758_p8 = scmp.lt.s32.totalorder %s1001_s26, %s756_s16 }
  0x43   : > { %p753_p1 = pnand %p751_p9, %p707_p3  ;;  %p759_p2 = scmp.lt.s32.totalorder %s757_s18, %s750_s7 }
  0x45   : > { %p754_p6 = pneg %p753_p1  ;;  %p760_p5 = por %p759_p2, %p758_p8 }
  0x47   : > { %p761_p4 = pnand %p760_p5, %p754_p6 }
  0x49   : > { %764 = shalt.err (!%p761_p4)
}
  0x4a   : > { %s857_s20 = smov 16   ;;  %s858_s4 = smov 1  }
  0x4b   : > { %619 = dma.hbm_to_vmem [thread:$0]  (!%p954_p0), %s999_s19, 64, %s1001_s26, %s170_s30, %s857_s20, %s857_s20, %s858_s4  }
  0x4c   : > { %194 = sbr.rel (%p992_p11) target bundleno = 215 (0xd7), region = 28  ;;  %s1032_s6 = sand.u32 (!%p992_p11), 1, %s835_s10  }
  0x4d   : > { %s598_s27 = sshll.u32 (!%p992_p11), %s1032_s6, 3  ;;  %s197_s28 = scalar_lea.sflag (!%p992_p11), [#allocation7], %s1032_s6 }
  0x4e   : > { %s200_s29 = scalar_lea.vmem (!%p992_p11), [#allocation6], %s598_s27  ;;  %p1188_p8 = scmp.ne.s32.totalorder (!%p992_p11), %s1182_s21, 0 }
  0x53   : > { %818 = dma.done.wait (%p1188_p8), %s197_s28, 128  }
  0x54   : > { %820 = vsyncadd (%p1188_p8), %s197_s28, 4294967168  ;;  %s599_s25 = sshll.u32 %s1032_s6, 2  ;;  %s206_s5 = scalar_lea.sflag [#allocation10], %s1032_s6 }
  0x55   : > { %s209_s15 = scalar_lea.vmem [#allocation9], %s599_s25 }
  0x56   : > { %822 = dma.done.wait (%p1188_p8), %s206_s5, 64  }
  0x57   : > { %824 = vsyncadd (%p1188_p8), %s206_s5, 4294967232  ;;  %v859_v0 = vmov 0.0   ;;  %v249_v1 = vld [vmem:[%s209_s15] sm:$0x1]  ;;  %v250_v2 = vld [vmem:[%s209_s15 + $0x1] sm:$0x1] }
  0x58   : > { %242 = vst [vmem:[#allocation3] sm:$0x3] %v859_v0  ;;  %241 = vst [vmem:[#allocation2] sm:$0x3] %v859_v0  ;;  %v251_v3 = vld [vmem:[%s209_s15 + $0x2] sm:$0x1]  ;;  %v1048_v5 = vunpack.c.l.bf16 %v249_v1  ;;  %v1050_v6 = vunpack.c.l.bf16 %v250_v2 }
  0x59   : > { %243 = vst [vmem:[#allocation4] sm:$0x3] %v859_v0  ;;  %244 = vst [vmem:[#allocation5] sm:$0x3] %v859_v0  ;;  %v252_v4 = vld [vmem:[%s209_s15 + $0x3] sm:$0x1]  ;;  %v1052_v10 = vunpack.c.l.bf16 %v251_v3 }
  0x5a   : > { %vm257_vm0 = vcmask 1041408   ;;  %v245_v7 = vld [vmem:[%s200_s29] sm:$0x3]  ;;  %v246_v8 = vld [vmem:[%s200_s29 + $0x2] sm:$0x3]  ;;  %v1054_v11 = vunpack.c.l.bf16 %v252_v4  ;;  %v362_v20 = vmul.f32 %v1048_v5, %v1048_v5  ;;  %v363_v25 = vmul.f32 %v1050_v6, %v1050_v6  ;;  %s234_s21 = scalar_lea.vmem [#allocation11], %s599_s25 }
  0x5b   : > { %v248_v9 = vld [vmem:[%s200_s29 + $0x6] sm:$0x3]  ;;  %v247_v12 = vld [vmem:[%s200_s29 + $0x4] sm:$0x3]  ;;  %v373_v13 = vmul.f32 %v1048_v5, %v245_v7  ;;  %v374_v14 = vmul.f32 %v1050_v6, %v246_v8  ;;  %v258_v24 = vsel %vm257_vm0, %v245_v7, -inf  ;;  %v364_v26 = vmul.f32 %v1052_v10, %v1052_v10  ;;  %s476_s19 = sshll.u32 %s234_s21, 4  ;;  %s1124_s19 = int_to_ptr.vmem [resolvable:$true] %s476_s19 }
  0x5c   : > { %v375_v15 = vmul.f32 %v1052_v10, %v247_v12  ;;  %v376_v16 = vmul.f32 %v1054_v11, %v248_v9  ;;  %v261_v17 = vsel %vm257_vm0, %v248_v9, -inf  ;;  %v365_v27 = vmul.f32 %v1054_v11, %v1054_v11  ;;  %s602_s26 = sshll.u32 %s843_s12, 6  ;;  %s462_s8 = scalar_lea.sflag [#allocation8], %s1032_s6 }
  0x5d   : > { %v377_v18 = vsel %vm257_vm0, %v373_v13, 0.0  ;;  %v378_v19 = vsel %vm257_vm0, %v374_v14, 0.0  ;;  %v366_v28 = vsel %vm257_vm0, %v362_v20, 0.0  ;;  %v259_v30 = vsel %vm257_vm0, %v246_v8, -inf  ;;  %s1129_s7 = scalar_lea.hbm %s1178_s2, %s602_s26  ;;  %s765_s12 = scalar_lea.vmem %s1124_s19, 64 }
  0x5e   : > { %v379_v21 = vadd.f32 %v378_v19, %v377_v18  ;;  %v380_v22 = vsel %vm257_vm0, %v375_v15, 0.0  ;;  %v382_v23 = vsel %vm257_vm0, %v376_v16, 0.0  ;;  %v260_v31 = vsel %vm257_vm0, %v247_v12, -inf  ;;  %p766_p0 = scmp.ne.s32.totalorder %s1124_s19, %s765_s12  ;;  %p1189_p3 = scmp.ne.s32.totalorder %s1183_s22, 0 }
  0x5f   : > { %v367_v32 = vsel %vm257_vm0, %v363_v25, 0.0  ;;  %v369_v33 = vsel %vm257_vm0, %v364_v26, 0.0  ;;  %v262_v34 = vmax.f32 %v258_v24, %v259_v30  ;;  %v263_v37 = vmax.f32 %v260_v31, %v261_v17  ;;  %s860_s16 = smov [#allocation11]  }
  0x60   : > { %v381_v29 = vadd.f32 %v380_v22, %v379_v21  ;;  %v368_v36 = vadd.f32 %v367_v32, %v366_v28  ;;  %v371_v38 = vsel %vm257_vm0, %v365_v27, 0.0  ;;  %v417_v42 = vld [vmem:[#allocation5] sm:$0x3]  ;;  %v384_v0 = vsel %vm257_vm0, %v1048_v5, 0.0  ;;  %v411_v22 = vld [vmem:[#allocation3] sm:$0x3]  ;;  %p767_p11 = pnand %p766_p0, %p1189_p3 }
  0x61   : > { %v264_v41 = vmax.f32 %v262_v34, %v263_v37  ;;  %v385_v1 = vsel %vm257_vm0, %v1050_v6, 0.0  ;;  %v387_v14 = vsel %vm257_vm0, %v1052_v10, 0.0  ;;  %v389_v17 = vsel %vm257_vm0, %v1054_v11, 0.0  ;;  %s769_s18 = sshll.u32 %s860_s16, 4  ;;  %s770_s18 = int_to_ptr.vmem [resolvable:$false] %s769_s18 }
  0x62   : > { %v383_v35 = vadd.f32 %v382_v23, %v381_v29  ;;  %v370_v40 = vadd.f32 %v369_v33, %v368_v36  ;;  %v414_v29 = vld [vmem:[#allocation4] sm:$0x3]  ;;  %vm455_vm1 = vcmask 1040384   ;;  %vm458_vm2 = vcmask 1042432   ;;  %p768_p13 = pneg %p767_p11  ;;  %s771_s20 = scalar_lea.vmem %s770_s18, 128 }
  0x63   : > { %v1080_v46 = vsub.f32 %v245_v7, %v264_v41  ;;  %v1082_v47 = vsub.f32 %v246_v8, %v264_v41  ;;  %v1084_v48 = vsub.f32 %v247_v12, %v264_v41  ;;  %v1086_v49 = vsub.f32 %v248_v9, %v264_v41  ;;  %p772_p7 = scmp.lt.s32.totalorder %s1124_s19, %s770_s18  ;;  %p773_p10 = scmp.lt.s32.totalorder %s771_s20, %s765_s12 }
  0x64   : > { %v391_v39 = vmax.f32 %v383_v35, 0.0  ;;  %v372_v45 = vadd.f32 %v371_v38, %v370_v40  ;;  %v386_v12 = vadd.f32 %v385_v1, %v384_v0 }
  0x65   : > { %v269_v53 = vmul.f32 1.442695, %v1080_v46  ;;  %v271_v54 = vmul.f32 1.442695, %v1082_v47  ;;  %v273_v55 = vmul.f32 1.442695, %v1084_v48  ;;  %p774_p12 = por %p773_p10, %p772_p7 }
  0x66   : > { %v392_v43 = vsub.f32 %v383_v35, %v391_v39  ;;  %v395_v44 = vsub.f32 0.0, %v391_v39  ;;  %v418_v52 = vadd.f32 %v417_v42, %v372_v45  ;;  %v275_v56 = vmul.f32 1.442695, %v1086_v49 }
  0x67   : > { %v388_v16 = vadd.f32 %v387_v14, %v386_v12  ;;  %p775_p9 = pnand %p774_p12, %p768_p13 }
  0x68   : > { %v393_v50 = vmul.f32 1.442695, %v392_v43  ;;  %v396_v51 = vmul.f32 1.442695, %v395_v44  ;;  %419 = vst [vmem:[#allocation5] sm:$0x3] %v418_v52 }
  0x69   : > { %v390_v18 = vadd.f32 %v389_v17, %v388_v16 }
  0x6a   : > { %679 = vpow2.f32 %v393_v50 }
  0x6b   : > { %681 = vpow2.f32 %v396_v51 }
  0x6c   : > { %683 = vpow2.f32 %v269_v53 }
  0x6d   : > { %685 = vpow2.f32 %v271_v54 }
  0x6e   : > { %687 = vpow2.f32 %v273_v55 }
  0x6f   : > { %689 = vpow2.f32 %v275_v56 }
  0x74   : > { %v680_v57 = vpop.eup %679 }
  0x75   : > { %v682_v58 = vpop.eup %681 }
  0x76   : > { %v684_v59 = vpop.eup %683  ;;  %v398_v60 = vmul.f32 3.0, %v682_v58 }
  0x77   : > { %v686_v61 = vpop.eup %685  ;;  %v277_v62 = vsel %vm257_vm0, %v684_v59, 0.0 }
  0x78   : > { %v688_v63 = vpop.eup %687  ;;  %v399_v2 = vadd.f32 %v680_v57, %v398_v60  ;;  %v278_v3 = vsel %vm257_vm0, %v686_v61, 0.0 }
  0x79   : > { %v690_v4 = vpop.eup %689  ;;  %v279_v7 = vadd.f32 %v278_v3, %v277_v62  ;;  %v280_v8 = vsel %vm257_vm0, %v688_v63, 0.0 }
  0x7a   : > { %691 = vrcp.f32 %v399_v2  ;;  %v282_v9 = vsel %vm257_vm0, %v690_v4, 0.0 }
  0x7b   : > { %v281_v13 = vadd.f32 %v280_v8, %v279_v7 }
  0x7d   : > { %v283_v15 = vadd.f32 %v282_v9, %v281_v13 }
  0x7f   : > { %693 = vrcp.f32 %v283_v15 }
  0x80   : > { %695 = vlog2.f32 %v283_v15 }
  0x84   : > { %v692_v19 = vpop.eup %691 }
  0x85   : > { %v401_v20 = vmul.f32 %v692_v19, %v680_v57  ;;  %v402_v21 = vmul.f32 %v692_v19, %v682_v58 }
  0x87   : > { %v403_v23 = vmul.f32 %v401_v20, %v390_v18  ;;  %v404_v24 = vmul.f32 %v401_v20, %v401_v20  ;;  %v405_v25 = vmul.f32 %v402_v21, %v402_v21 }
  0x89   : > { %v694_v26 = vpop.eup %693  ;;  %v412_v27 = vadd.f32 %v411_v22, %v403_v23  ;;  %v406_v28 = vmul.f32 3.0, %v405_v25 }
  0x8a   : > { %v285_v30 = vmul.f32 %v694_v26, %v684_v59  ;;  %v286_v31 = vmul.f32 %v694_v26, %v686_v61  ;;  %v287_v32 = vmul.f32 %v694_v26, %v688_v63  ;;  %v288_v33 = vmul.f32 %v694_v26, %v690_v4  ;;  %v696_v44 = vpop.eup %695 }
  0x8b   : > { %413 = vst [vmem:[#allocation3] sm:$0x3] %v412_v27  ;;  %v407_v34 = vadd.f32 %v406_v28, %v404_v24  ;;  %v294_v52 = vmul.f32 0.6931472, %v696_v44 }
  0x8c   : > { %v289_v35 = vadd.f32 1e-08, %v285_v30  ;;  %v290_v36 = vadd.f32 1e-08, %v286_v31  ;;  %v291_v37 = vadd.f32 1e-08, %v287_v32 }
  0x8d   : > { %v415_v38 = vadd.f32 %v414_v29, %v407_v34  ;;  %v292_v39 = vadd.f32 1e-08, %v288_v33  ;;  %v295_v54 = vsub.f32 %v1080_v46, %v294_v52  ;;  %v296_v56 = vsub.f32 %v1082_v47, %v294_v52 }
  0x8e   : > { %v303_v40 = vsub.f32 1.0, %v289_v35  ;;  %v304_v41 = vsub.f32 1.0, %v290_v36  ;;  %v305_v42 = vsub.f32 1.0, %v291_v37  ;;  %v297_v58 = vsub.f32 %v1084_v48, %v294_v52 }
  0x8f   : > { %416 = vst [vmem:[#allocation4] sm:$0x3] %v415_v38  ;;  %v306_v43 = vsub.f32 1.0, %v292_v39  ;;  %v323_v60 = vmul.f32 %v289_v35, %v289_v35  ;;  %v298_v61 = vsub.f32 %v1086_v49, %v294_v52  ;;  %v324_v63 = vmul.f32 %v290_v36, %v290_v36  ;;  %v408_v52 = vld [vmem:[#allocation2] sm:$0x3] }
  0x90   : > { %v307_v45 = vmax.f32 %v303_v40, 1e-08  ;;  %v308_v50 = vmax.f32 %v304_v41, 1e-08  ;;  %v309_v51 = vmax.f32 %v305_v42, 1e-08  ;;  %v325_v2 = vmul.f32 %v291_v37, %v291_v37 }
  0x91   : > { %v310_v53 = vmax.f32 %v306_v43, 1e-08  ;;  %v299_v0 = vmax.f32 %v295_v54, -18.420681  ;;  %v300_v3 = vmax.f32 %v296_v56, -18.420681  ;;  %v326_v7 = vmul.f32 %v292_v39, %v292_v39 }
  0x92   : > { %697 = vlog2.f32 %v307_v45  ;;  %v311_v55 = vmul.f32 %v307_v45, %v307_v45  ;;  %v312_v57 = vmul.f32 %v308_v50, %v308_v50  ;;  %v313_v59 = vmul.f32 %v309_v51, %v309_v51 }
  0x93   : > { %699 = vlog2.f32 %v308_v50  ;;  %v314_v62 = vmul.f32 %v310_v53, %v310_v53  ;;  %v301_v46 = vmax.f32 %v297_v58, -18.420681  ;;  %v327_v9 = vmul.f32 -0.25, %v323_v60  ;;  %v431_v50 = vld [vmem:[#allocation3] sm:$0x3] }
  0x94   : > { %701 = vlog2.f32 %v309_v51  ;;  %v315_v1 = vmul.f32 -0.75, %v311_v55  ;;  %v316_v4 = vmul.f32 -0.75, %v312_v57  ;;  %v317_v8 = vmul.f32 -0.75, %v313_v59 }
  0x95   : > { %703 = vlog2.f32 %v310_v53  ;;  %v302_v47 = vmax.f32 %v298_v61, -18.420681  ;;  %v318_v13 = vmul.f32 -0.75, %v314_v62  ;;  %v328_v14 = vmul.f32 -0.25, %v324_v63 }
  0x96   : > { %v319_v15 = vmul.f32 %v315_v1, %v299_v0  ;;  %v329_v16 = vmul.f32 -0.25, %v325_v2  ;;  %v320_v18 = vmul.f32 %v316_v4, %v300_v3  ;;  %v330_v19 = vmul.f32 -0.25, %v326_v7 }
  0x97   : > { %v321_v22 = vmul.f32 %v317_v8, %v301_v46  ;;  %v322_v25 = vmul.f32 %v318_v13, %v302_v47 }
  0x9c   : > { %v698_v12 = vpop.eup %697 }
  0x9d   : > { %v700_v48 = vpop.eup %699  ;;  %v332_v17 = vmul.f32 0.6931472, %v698_v12 }
  0x9e   : > { %v702_v49 = vpop.eup %701  ;;  %v334_v20 = vmul.f32 0.6931472, %v700_v48 }
  0x9f   : > { %v704_v21 = vpop.eup %703  ;;  %v336_v23 = vmul.f32 0.6931472, %v702_v49  ;;  %v339_v24 = vmul.f32 %v332_v17, %v327_v9 }
  0xa0   : > { %v338_v26 = vmul.f32 0.6931472, %v704_v21  ;;  %v340_v27 = vmul.f32 %v334_v20, %v328_v14 }
  0xa1   : > { %v341_v28 = vmul.f32 %v336_v23, %v329_v16  ;;  %v343_v29 = vsub.f32 %v319_v15, %v339_v24 }
  0xa2   : > { %v342_v30 = vmul.f32 %v338_v26, %v330_v19  ;;  %v344_v31 = vsub.f32 %v320_v18, %v340_v27 }
  0xa3   : > { %v345_v32 = vsub.f32 %v321_v22, %v341_v28  ;;  %v347_v33 = vmul.f32 %v343_v29, %v1048_v5 }
  0xa4   : > { %v346_v34 = vsub.f32 %v322_v25, %v342_v30  ;;  %v348_v35 = vmul.f32 %v344_v31, %v1050_v6  ;;  %v439_v6 = vld [vmem:[#allocation4] sm:$0x3] }
  0xa5   : > { %v349_v36 = vmul.f32 %v345_v32, %v1052_v10  ;;  %v351_v37 = vadd.f32 %v347_v33, %v339_v24  ;;  %v447_v10 = vld [vmem:[#allocation5] sm:$0x3]  ;;  %v440_v54 = vsel %vm257_vm0, %v439_v6, 0.0 }
  0xa6   : > { %v350_v38 = vmul.f32 %v346_v34, %v1054_v11  ;;  %v352_v39 = vadd.f32 %v348_v35, %v340_v27  ;;  %v432_v11 = vsel %vm257_vm0, %v431_v50, 0.0  ;;  %v448_v56 = vsel %vm257_vm0, %v447_v10, 0.0 }
  0xa7   : > { %v353_v40 = vadd.f32 %v349_v36, %v341_v28  ;;  %v355_v41 = vsel %vm257_vm0, %v351_v37, 0.0  ;;  %v433_v57 = vrot.slane %v432_v11, 4  ;;  %v441_v58 = vrot.slane %v440_v54, 4 }
  0xa8   : > { %v354_v42 = vadd.f32 %v350_v38, %v342_v30  ;;  %v356_v43 = vsel %vm257_vm0, %v352_v39, 0.0  ;;  %v449_v59 = vrot.slane %v448_v56, 4 }
  0xa9   : > { %v357_v44 = vadd.f32 %v356_v43, %v355_v41  ;;  %v358_v45 = vsel %vm257_vm0, %v353_v40, 0.0  ;;  %v434_v60 = vadd.f32 %v433_v57, %v432_v11  ;;  %v442_v61 = vadd.f32 %v441_v58, %v440_v54 }
  0xaa   : > { %v360_v5 = vsel %vm257_vm0, %v354_v42, 0.0  ;;  %v450_v62 = vadd.f32 %v449_v59, %v448_v56 }
  0xab   : > { %v359_v51 = vadd.f32 %v358_v45, %v357_v44  ;;  %v435_v0 = vrot.slane %v434_v60, 2  ;;  %v443_v2 = vrot.slane %v442_v61, 2 }
  0xac   : > { %v451_v4 = vrot.slane %v450_v62, 2 }
  0xad   : > { %v361_v53 = vadd.f32 %v360_v5, %v359_v51  ;;  %v436_v46 = vadd.f32 %v435_v0, %v434_v60  ;;  %v444_v8 = vadd.f32 %v443_v2, %v442_v61 }
  0xae   : > { %v452_v12 = vadd.f32 %v451_v4, %v450_v62 }
  0xaf   : > { %v409_v55 = vadd.f32 %v408_v52, %v361_v53  ;;  %v437_v13 = vrot.slane %v436_v46, 1  ;;  %v445_v14 = vrot.slane %v444_v8, 1 }
  0xb0   : > { %v453_v15 = vrot.slane %v452_v12, 1 }
  0xb1   : > { %410 = vst [vmem:[#allocation2] sm:$0x3] %v409_v55  ;;  %v438_v17 = vadd.f32 %v437_v13, %v436_v46  ;;  %v446_v49 = vadd.f32 %v445_v14, %v444_v8 }
  0xb2   : > { %v454_v18 = vadd.f32 %v453_v15, %v452_v12 }
  0xb8   : > { %v423_v63 = vld [vmem:[#allocation2] sm:$0x3] }
  0xb9   : > { %v424_v1 = vsel %vm257_vm0, %v423_v63, 0.0 }
  0xba   : > { %v425_v3 = vrot.slane %v424_v1, 4 }
  0xbc   : > { %v426_v7 = vadd.f32 %v425_v3, %v424_v1 }
  0xbe   : > { %v427_v9 = vrot.slane %v426_v7, 2 }
  0xc0   : > { %v428_v47 = vadd.f32 %v427_v9, %v426_v7 }
  0xc2   : > { %v429_v48 = vrot.slane %v428_v47, 1 }
  0xc4   : > { %v430_v16 = vadd.f32 %v429_v48, %v428_v47 }
  0xc6   : > { %v456_v19 = vsel %vm455_vm1, %v430_v16, %v438_v17 }
  0xc7   : > { %v457_v20 = vsel %vm257_vm0, %v456_v19, %v446_v49 }
  0xc8   : > { %v459_v21 = vsel %vm458_vm2, %v457_v20, %v454_v18 }
  0xc9   : > { %460 = vst [vmem:[%s234_s21] sm:$0xf] %v459_v21 }
  0xca   : > { %778 = shalt.err (!%p775_p9)
}
  0xcb   : > { %s779_s4 = scalar_lea.hbm %s1129_s7, 64  ;;  %s783_s28 = scalar_lea.hbm %s1178_s2, 128 }
  0xcc   : > { %p780_p1 = scmp.ne.s32.totalorder %s1129_s7, %s779_s4  ;;  %p784_p5 = scmp.lt.u32.totalorder %s1129_s7, %s1178_s2 }
  0xcd   : > { %p785_p4 = scmp.lt.u32.totalorder %s783_s28, %s779_s4  ;;  %p787_p0 = scmp.lt.u32.totalorder %s779_s4, %s1129_s7 }
  0xce   : > { %p781_p6 = pnand %p780_p1, %p1189_p3 }
  0xcf   : > { %p786_p8 = por %p785_p4, %p784_p5 }
  0xd0   : > { %p782_p2 = pneg %p781_p6 }
  0xd1   : > { %p788_p11 = por %p787_p0, %p786_p8 }
  0xd3   : > { %p789_p13 = pnand %p788_p11, %p782_p2 }
  0xd5   : > { %792 = shalt.err (!%p789_p13)
}
  0xd6   : > { %611 = dma.vmem_to_hbm [thread:$0]  (%p1189_p3), %s1124_s19, 64, %s1129_s7, %s462_s8  }
  0xd7 PF: > { %s488_s5 = sand.u32 1, %s831_s9   ;;  %p1190_p7 = scmp.ne.s32.totalorder %s1184_s24, 0 }
  0xd8   : > { %p1191_p10 = scmp.ge.s32.totalorder %s851_s14, 2  ;;  %s489_s15 = scalar_lea.sflag [#allocation8], %s488_s5 }
  0xda   : > { %p621_p12 = pnand %p1191_p10, %p1190_p7 }
  0xdc   : > { %826 = dma.done.wait (!%p621_p12), %s489_s15, 64  }
  0xdd   : > { %828 = vsyncadd (!%p621_p12), %s489_s15, 4294967232  ;;  %s21_s14 = sadd.s32 1, %s851_s14   ;;  %s1192_s9 = smov %s835_s10 }
  0xde   : > { %p18_p9 = scmp.ge.s32.totalorder %s21_s14, 4   ;;  %s1193_s10 = smov %s839_s11 }
  0xdf   : > { %s1194_s11 = smov %s932_s23  ;;  %s1195_s12 = smov %s847_s13 }
  0xe0   : > { %s1196_s13 = smov %s1198_s17  ;;  %20 = sbr.rel (!%p18_p9) target bundleno = 8 (0x8), region = 94 }
  0xe7   :  { %494 = vsyncpa [#allocation7], 1 }
  0xe8   :  { %496 = vsyncpa [#allocation7 + $0x1], 1 }
  0xe9   :  { %497 = vsyncpa [#allocation10], 1 }
  0xea   :  { %499 = vsyncpa [#allocation10 + $0x1], 1 }
  0xeb   :  { %500 = vsyncpa [#allocation8], 1 }
  0xec   :  { %502 = vsyncpa [#allocation8 + $0x1], 1 }

</bundles_post_ra>
